<compile_context>
chip_gen: v7x
topology: tpu7x:2x2x1
jax: 0.10.0
libtpu: 0.0.40
codegen_flags: <defaults>
</compile_context>

<pallas_src>
import jax
import jax.numpy as jnp
from jax.experimental import pallas as pl
from jax.experimental.pallas import tpu as pltpu


def _normalize_kernel(scale_ref, bias_ref, x_ref, o_ref):
    # x_ref:     (rb, cb)  lane-dense tile of the flattened image
    # scale_ref: (rb, 1)   per-row 1/std   (row = flattened (n, c) index)
    # bias_ref:  (rb, 1)   per-row -mean/std
    # (x - mean) / std  ==  x * (1/std) + (-mean/std)
    o_ref[...] = x_ref[...] * scale_ref[...] + bias_ref[...]


def _choose_block(rows, cols, dtype):
    """Pick a (rb, cb) block: lane-dense, (sublane, 128)-aligned, ~1 MiB."""
    lane = 128
    itemsize = jnp.dtype(dtype).itemsize
    # Sublane multiple for packed dtypes: 8 for f32, 16 for bf16, 32 for int8.
    sub = max(8, 32 // itemsize)
    target_elems = (1 * 1024 * 1024) // itemsize  # ~1 MiB per block

    if cols % lane == 0:
        cb = (min(cols, target_elems) // lane) * lane
        cb = min(cols, max(lane, cb))
    else:
        # Full-extent last dim is always a legal block shape.
        cb = cols

    if rows % sub == 0:
        rb_want = max(1, target_elems // cb)
        rb = min(rows, max(sub, (rb_want // sub) * sub))
    else:
        rb = rows
    return rb, cb


def normalization_forward(img, mean, std):
    """img: (N, C, H, W); mean, std: (C,) per-channel statistics."""
    N, C, H, W = img.shape
    rows, cols = N * C, H * W
    itemsize = jnp.dtype(img.dtype).itemsize

    # Free re-layout: contiguous NCHW -> (N*C, H*W), lane axis = H*W.
    x2 = img.reshape(rows, cols)

    # Tiny per-channel precompute (fp32), replicated per batch -> per-row.
    inv_std = 1.0 / std.astype(jnp.float32)
    scale_rows = jnp.tile(inv_std, N).reshape(rows, 1).astype(img.dtype)
    bias_rows = jnp.tile(-mean.astype(jnp.float32) * inv_std, N)
    bias_rows = bias_rows.reshape(rows, 1).astype(img.dtype)

    rb, cb = _choose_block(rows, cols, img.dtype)
    grid = (pl.cdiv(rows, rb), pl.cdiv(cols, cb))

    out2 = pl.pallas_call(
        _normalize_kernel,
        out_shape=jax.ShapeDtypeStruct((rows, cols), img.dtype),
        grid_spec=pltpu.PrefetchScalarGridSpec(
            num_scalar_prefetch=0,
            grid=grid,
            in_specs=[
                # per-row scale / bias: one (rb, 1) column per row-tile
                pl.BlockSpec((rb, 1), lambda i, j: (i, 0)),
                pl.BlockSpec((rb, 1), lambda i, j: (i, 0)),
                # image tile: lane-dense (rb, cb)
                pl.BlockSpec((rb, cb), lambda i, j: (i, j)),
            ],
            out_specs=pl.BlockSpec((rb, cb), lambda i, j: (i, j)),
        ),
        compiler_params=pltpu.CompilerParams(
            dimension_semantics=("parallel", "parallel"),
        ),
        cost_estimate=pl.CostEstimate(
            flops=2 * rows * cols,
            transcendentals=0,
            bytes_accessed=2 * rows * cols * itemsize + 2 * rows * itemsize,
        ),
    )(scale_rows, bias_rows, x2)

    return out2.reshape(N, C, H, W)


if __name__ == "__main__":
    # Small deterministic example consistent with an NCHW image input.
    N, C, H, W = 2, 4, 16, 16
    key = jax.random.PRNGKey(0)
    k_img, k_mean, k_std = jax.random.split(key, 3)

    img = jax.random.normal(k_img, (N, C, H, W), dtype=jnp.float32)
    # Deterministic synthetic per-channel statistics (the module's __init__
    # takes mean/std tensors of length C).
    mean = jax.random.normal(k_mean, (C,), dtype=jnp.float32) * 0.1 + 0.5
    std = jax.random.uniform(k_std, (C,), dtype=jnp.float32) * 0.5 + 0.5

    out = normalization_forward(img, mean, std)
    out = jax.block_until_ready(out)

    # Reference check against plain JAX (same semantics as the PyTorch module).
    ref = (img - mean.reshape(C, 1, 1)) / std.reshape(C, 1, 1)
    assert out.shape == (N, C, H, W)
    # Slightly looser tolerance: kernel uses x*(1/std) - mean*(1/std) (division
    # folded into a precomputed reciprocal), which reassociates the fp math.
    assert jnp.allclose(out, ref, atol=1e-5, rtol=1e-5), (
        float(jnp.max(jnp.abs(out - ref)))
    )

    print("KERNEL_OK")
</pallas_src>

<mosaic_0001>
module attributes {stable_mosaic.version = 11 : i64} {
  func.func @_normalize_kernel(%arg0: i32, %arg1: i32, %arg2: memref<8x1xf32, #tpu.memory_space<vmem>>, %arg3: memref<8x1xf32, #tpu.memory_space<vmem>>, %arg4: memref<8x256xf32, #tpu.memory_space<vmem>>, %arg5: memref<8x256xf32, #tpu.memory_space<vmem>>) attributes {dimension_semantics = [#tpu.dimension_semantics<parallel>, #tpu.dimension_semantics<parallel>], iteration_bounds = array<i64: 1, 1>, scalar_prefetch = 0 : i64, scratch_operands = 0 : i64, tpu.core_type = #tpu.core_type<tc>, window_params = [{transform_indices = @transform_0, window_bounds = array<i64: 8, 1>}, {transform_indices = @transform_1, window_bounds = array<i64: 8, 1>}, {transform_indices = @transform_2, window_bounds = array<i64: 8, 256>}, {transform_indices = @transform_3, window_bounds = array<i64: 8, 256>}]} {
    %c0 = arith.constant 0 : index
    %c0_0 = arith.constant 0 : index
    %0 = vector.load %arg4[%c0, %c0_0] : memref<8x256xf32, #tpu.memory_space<vmem>>, vector<8x256xf32>
    %c0_1 = arith.constant 0 : index
    %c0_2 = arith.constant 0 : index
    %1 = vector.load %arg2[%c0_1, %c0_2] : memref<8x1xf32, #tpu.memory_space<vmem>>, vector<8x1xf32>
    %2 = vector.broadcast %1 : vector<8x1xf32> to vector<8x256xf32>
    %3 = arith.mulf %0, %2 : vector<8x256xf32>
    %c0_3 = arith.constant 0 : index
    %c0_4 = arith.constant 0 : index
    %4 = vector.load %arg3[%c0_3, %c0_4] : memref<8x1xf32, #tpu.memory_space<vmem>>, vector<8x1xf32>
    %5 = vector.broadcast %4 : vector<8x1xf32> to vector<8x256xf32>
    %6 = arith.addf %3, %5 : vector<8x256xf32>
    %c0_5 = arith.constant 0 : index
    %c0_6 = arith.constant 0 : index
    %7 = vector.load %arg5[%c0_5, %c0_6] : memref<8x256xf32, #tpu.memory_space<vmem>>, vector<8x256xf32>
    tpu.vector_store %arg5[%c0_5, %c0_6], %6 {strides = array<i32>} : memref<8x256xf32, #tpu.memory_space<vmem>>, vector<8x256xf32>,
    return
  }
  func.func @transform_0(%arg0: i32, %arg1: i32) -> (i32, i32) {
    %c0_i32 = arith.constant 0 : i32
    %c0_i32_0 = arith.constant 0 : i32
    return %arg0, %c0_i32 : i32, i32
  }
  func.func @transform_1(%arg0: i32, %arg1: i32) -> (i32, i32) {
    %c0_i32 = arith.constant 0 : i32
    %c0_i32_0 = arith.constant 0 : i32
    return %arg0, %c0_i32 : i32, i32
  }
  func.func @transform_2(%arg0: i32, %arg1: i32) -> (i32, i32) {
    %c0_i32 = arith.constant 0 : i32
    return %arg0, %arg1 : i32, i32
  }
  func.func @transform_3(%arg0: i32, %arg1: i32) -> (i32, i32) {
    %c0_i32 = arith.constant 0 : i32
    return %arg0, %arg1 : i32, i32
  }
}

</mosaic_0001>

<bundles_post_ra>
// kernel: tpu_custom_call.1
= control target key start
LH: loop header
LB: loop body
LE: loop exit
PB: predicated region body
PF: predicated region fallthrough
CT: control target
= control target key end

     0   :  { %s122_s0 = inlined_call_operand.vmem [shape: f32[8,1], index: 0, kind: input, shape index: {}]   ;;  %s123_s1 = inlined_call_operand.vmem [shape: f32[8,1], index: 1, kind: input, shape index: {}]   ;;  %s124_s2 = inlined_call_operand.vmem [shape: f32[8,256], index: 2, kind: input, shape index: {}]   ;;  %s125_s3 = inlined_call_operand.hbm [shape: f32[8,256], index: 3, kind: output, shape index: {}]  }
   0x1   :  { %v17_v0 = vld [vmem:[%s122_s0] sm:$0xff] }
   0x2   :  { %8 = vsyncpa [#allocation3], 0  ;;  %v76_v1 = vmov 0   ;;  %v25_v2 = vld [vmem:[%s123_s1] sm:$0xff]  ;;  %v16_v5 = vld [vmem:[%s124_s2 + $0x8] sm:$0xff]  ;;  %s77_s20 = smov [#allocation2]  }
   0x3   :  { %51 = vset.pattern.permute.xlu0 %v76_v1  ;;  %v15_v4 = vld [vmem:[%s124_s2] sm:$0xff]  ;;  %s41_s0 = sshll.u32 %s77_s20, 4  ;;  %s42_s0 = int_to_ptr.vmem [resolvable:$true] %s41_s0 }
   0x4   :  { %20 = vperm.xlu0 %51, %v17_v0   ;;  %s52_s1 = scalar_lea.vmem %s42_s0, 256  ;;  %p57_p1 = scmp.lt.s32.totalorder %s42_s0, %s42_s0 }
   0x5   :  { %p53_p0 = scmp.ne.s32.totalorder %s42_s0, %s52_s1  ;;  %p58_p2 = scmp.lt.s32.totalorder %s52_s1, %s52_s1 }
   0x7   :  { %p59_p3 = por %p58_p2, %p57_p1 }
   0x8   :  { %28 = vperm.xlu0 %51, %v25_v2  }
   0x9   :  { %p60_p4 = pnand %p59_p3, %p53_p0 }
  0x83   :  { %v21_v3 = vpop.permute.xlu0 %20 }
  0x84   :  { %v23_v6 = vmul.f32 %v21_v3, %v15_v4  ;;  %v24_v7 = vmul.f32 %v21_v3, %v16_v5 }
  0x87   :  { %v29_v8 = vpop.permute.xlu0 %28 }
  0x88   :  { %v31_v9 = vadd.f32 %v29_v8, %v23_v6  ;;  %v32_v10 = vadd.f32 %v29_v8, %v24_v7 }
  0x8a   :  { %33 = vst [vmem:[#allocation2] sm:$0xff] %v31_v9  ;;  %34 = vst [vmem:[#allocation2 + $0x8] sm:$0xff] %v32_v10 }
  0x8b   :  { %63 = shalt.err (!%p60_p4)
}
  0x8c   :  { %s64_s2 = scalar_lea.hbm %s125_s3, 256 }
  0x8d   :  { %p65_p5 = scmp.ne.s32.totalorder %s125_s3, %s64_s2  ;;  %p68_p6 = scmp.lt.u32.totalorder %s64_s2, %s125_s3 }
  0x8f   :  { %p70_p7 = pnand %p68_p6, %p65_p5 }
  0x91   :  { %73 = shalt.err (!%p70_p7)
}
  0x92   :  { %44 = dma.vmem_to_hbm [thread:$0]  %s42_s0, 256, %s125_s3, [#allocation3]  }
  0x93   :  { %74 = dma.done.wait [#allocation3], 256  }
  0x94   :  { %75 = vsyncadd [#allocation3], 4294967040 }
  0x95   :  { %48 = vsyncpa [#allocation3], 1 }

</bundles_post_ra>
